<compile_context>
chip_gen: v6e
topology: v6e:2x2x1
jax: 0.10.0
libtpu: 0.0.40
codegen_flags: <defaults>
</compile_context>

<pallas_src>
import functools

import jax
import jax.numpy as jnp
from jax import lax
from jax.experimental import pallas as pl
from jax.experimental.pallas import tpu as pltpu

_NEG_BIG = -1e30  # logit value for padded class lanes (safely underflows exp)


def mlp_kernel(x_ref, w1_ref, b1_ref, w2_ref, b2_ref, o_ref):
    x = x_ref[...]                                   # (TM, D)   mxu dtype
    w1 = w1_ref[...]                                 # (Hp, D)   torch layout
    w2 = w2_ref[...]                                 # (Cp, Hp)  torch layout

    # hidden = ReLU(x @ W1^T + b1): contract last dims of both operands.
    h = lax.dot_general(x, w1, (((1,), (1,)), ((), ())),
                        preferred_element_type=jnp.float32)      # (TM, Hp) f32
    h = jnp.maximum(h + b1_ref[...], 0.0)                        # f32 elementwise

    # logits = hidden @ W2^T + b2 (cast hidden to MXU dtype only for the matmul).
    logits = lax.dot_general(h.astype(w2.dtype), w2, (((1,), (1,)), ((), ())),
                             preferred_element_type=jnp.float32)  # (TM, Cp) f32
    logits = logits + b2_ref[...]

    # Numerically stable log_softmax over the (lane-dense, padded) class axis.
    m = jnp.max(logits, axis=-1, keepdims=True)
    shifted = logits - m
    lse = jnp.log(jnp.sum(jnp.exp(shifted), axis=-1, keepdims=True))
    o_ref[...] = (shifted - lse).astype(o_ref.dtype)


def _round_up(a: int, b: int) -> int:
    return (a + b - 1) // b * b


@functools.partial(jax.jit, static_argnames=("input_size", "use_bf16"))
def mlp_forward(x, w1, b1, w2, b2, *, input_size: int, use_bf16: bool = False):
    """x: any shape reshapable to (-1, input_size).  Returns (N, C) log-probs (f32).

    w1: (H, D), b1: (H,), w2: (C, H), b2: (C,)  -- PyTorch nn.Linear layout.
    """
    x2d = x.reshape(-1, input_size)                  # == torch x.view(-1, D)
    N, D = x2d.shape
    H = w1.shape[0]
    C = w2.shape[0]

    mxu_dtype = jnp.bfloat16 if use_bf16 else jnp.float32

    # --- lane-dense padding of the hidden / class dims (one-time per call; in
    # a serving setup the padded weights would be prepared once offline). ---
    LANE = 128
    Hp = _round_up(max(H, LANE), LANE)
    Cp = _round_up(max(C, LANE), LANE)

    w1_p = jnp.zeros((Hp, D), mxu_dtype).at[:H, :].set(w1.astype(mxu_dtype))
    b1_p = jnp.zeros((1, Hp), jnp.float32).at[0, :H].set(b1.astype(jnp.float32))
    w2_p = jnp.zeros((Cp, Hp), mxu_dtype).at[:C, :H].set(w2.astype(mxu_dtype))
    b2_p = jnp.full((1, Cp), _NEG_BIG, jnp.float32).at[0, :C].set(
        b2.astype(jnp.float32))

    # --- row tiling: pad N to the sublane/tile grain; weights stay resident. ---
    TM_MAX = 512                      # multiple of 256: good for v6e/v7x MXU fill
    if N <= TM_MAX:
        tm = max(8, _round_up(N, 8))
        n_pad = tm
    else:
        tm = TM_MAX
        n_pad = _round_up(N, tm)

    x_p = jnp.zeros((n_pad, D), mxu_dtype).at[:N, :].set(x2d.astype(mxu_dtype))

    grid = (n_pad // tm,)
    out = pl.pallas_call(
        mlp_kernel,
        out_shape=jax.ShapeDtypeStruct((n_pad, Cp), jnp.float32),
        grid=grid,
        in_specs=[
            pl.BlockSpec((tm, D), lambda i: (i, 0)),     # activation stream
            pl.BlockSpec((Hp, D), lambda i: (0, 0)),     # W1 resident
            pl.BlockSpec((1, Hp), lambda i: (0, 0)),     # b1 resident
            pl.BlockSpec((Cp, Hp), lambda i: (0, 0)),    # W2 resident
            pl.BlockSpec((1, Cp), lambda i: (0, 0)),     # b2 resident
        ],
        out_specs=pl.BlockSpec((tm, Cp), lambda i: (i, 0)),   # lane-dense output
        compiler_params=pltpu.CompilerParams(
            dimension_semantics=("parallel",)),          # 2 TCs on v7x
    )(x_p, w1_p, b1_p, w2_p, b2_p)

    return out[:N, :C]


if __name__ == "__main__":
    # Module config: input_size=64, hidden_size=32, num_classes=10
    input_size, hidden_size, num_classes = 64, 32, 10

    key = jax.random.PRNGKey(0)
    kx, kw1, kb1, kw2, kb2 = jax.random.split(key, 5)

    # Deterministic "weights" (torch Linear layout: (out_features, in_features))
    w1 = jax.random.normal(kw1, (hidden_size, input_size), jnp.float32) * 0.1
    b1 = jax.random.normal(kb1, (hidden_size,), jnp.float32) * 0.1
    w2 = jax.random.normal(kw2, (num_classes, hidden_size), jnp.float32) * 0.1
    b2 = jax.random.normal(kb2, (num_classes,), jnp.float32) * 0.1

    # Input: (2, 4, 16) -> view(-1, 64) -> (2, 64)
    x = jax.random.normal(kx, (2, 4, 16), jnp.float32)

    out = mlp_forward(x, w1, b1, w2, b2, input_size=input_size, use_bf16=False)
    out = jax.block_until_ready(out)

    # Pure-JAX reference check
    x2d = x.reshape(-1, input_size)
    h = jnp.maximum(x2d @ w1.T + b1, 0.0)
    logits = h @ w2.T + b2
    ref = jax.nn.log_softmax(logits, axis=1)
    assert out.shape == (2, num_classes)
    assert jnp.allclose(out, ref, atol=1e-5), "mismatch vs reference"

    print("KERNEL_OK")
</pallas_src>

<mosaic_0001>
module attributes {stable_mosaic.version = 11 : i64} {
  func.func @mlp_kernel(%arg0: i32, %arg1: memref<8x64xf32, #tpu.memory_space<vmem>>, %arg2: memref<128x64xf32, #tpu.memory_space<vmem>>, %arg3: memref<1x128xf32, #tpu.memory_space<vmem>>, %arg4: memref<128x128xf32, #tpu.memory_space<vmem>>, %arg5: memref<1x128xf32, #tpu.memory_space<vmem>>, %arg6: memref<8x128xf32, #tpu.memory_space<vmem>>) attributes {dimension_semantics = [#tpu.dimension_semantics<parallel>], iteration_bounds = array<i64: 1>, scalar_prefetch = 0 : i64, scratch_operands = 0 : i64, tpu.core_type = #tpu.core_type<tc>, window_params = [{transform_indices = @transform_0, window_bounds = array<i64: 8, 64>}, {pipeline_mode = #tpu.pipeline_mode<synchronous>, transform_indices = @transform_1, window_bounds = array<i64: 128, 64>}, {pipeline_mode = #tpu.pipeline_mode<synchronous>, transform_indices = @transform_2, window_bounds = array<i64: 1, 128>}, {pipeline_mode = #tpu.pipeline_mode<synchronous>, transform_indices = @transform_3, window_bounds = array<i64: 128, 128>}, {pipeline_mode = #tpu.pipeline_mode<synchronous>, transform_indices = @transform_4, window_bounds = array<i64: 1, 128>}, {transform_indices = @transform_5, window_bounds = array<i64: 8, 128>}]} {
    %c0 = arith.constant 0 : index
    %c0_0 = arith.constant 0 : index
    %0 = vector.load %arg1[%c0, %c0_0] : memref<8x64xf32, #tpu.memory_space<vmem>>, vector<8x64xf32>
    %c0_1 = arith.constant 0 : index
    %c0_2 = arith.constant 0 : index
    %1 = vector.load %arg2[%c0_1, %c0_2] : memref<128x64xf32, #tpu.memory_space<vmem>>, vector<128x64xf32>
    %c0_3 = arith.constant 0 : index
    %c0_4 = arith.constant 0 : index
    %2 = vector.load %arg4[%c0_3, %c0_4] : memref<128x128xf32, #tpu.memory_space<vmem>>, vector<128x128xf32>
    %cst = arith.constant dense<0.000000e+00> : vector<8x128xf32>
    %3 = tpu.matmul %0, %1, %cst {dimension_numbers = #tpu.dot_dimension_numbers<[1], [1], [0], [0], [0, 0, 1, 0], [], []>} : vector<8x64xf32>, vector<128x64xf32>, vector<8x128xf32> -> vector<8x128xf32>
    %c0_5 = arith.constant 0 : index
    %c0_6 = arith.constant 0 : index
    %4 = vector.load %arg3[%c0_5, %c0_6] : memref<1x128xf32, #tpu.memory_space<vmem>>, vector<1x128xf32>
    %5 = vector.broadcast %4 : vector<1x128xf32> to vector<8x128xf32>
    %6 = arith.addf %3, %5 : vector<8x128xf32>
    %cst_7 = arith.constant 0.000000e+00 : f32
    %7 = vector.broadcast %cst_7 : f32 to vector<8x128xf32>
    %8 = arith.maximumf %6, %7 : vector<8x128xf32>
    %cst_8 = arith.constant dense<0.000000e+00> : vector<8x128xf32>
    %9 = tpu.matmul %8, %2, %cst_8 {dimension_numbers = #tpu.dot_dimension_numbers<[1], [1], [0], [0], [0, 0, 1, 0], [], []>} : vector<8x128xf32>, vector<128x128xf32>, vector<8x128xf32> -> vector<8x128xf32>
    %c0_9 = arith.constant 0 : index
    %c0_10 = arith.constant 0 : index
    %10 = vector.load %arg5[%c0_9, %c0_10] : memref<1x128xf32, #tpu.memory_space<vmem>>, vector<1x128xf32>
    %11 = vector.broadcast %10 : vector<1x128xf32> to vector<8x128xf32>
    %12 = arith.addf %9, %11 : vector<8x128xf32>
    %cst_11 = arith.constant dense<0xFF800000> : vector<8xf32>
    %13 = vector.multi_reduction <maximumf>, %12, %cst_11 [1] : vector<8x128xf32> to vector<8xf32>
    %14 = vector.shape_cast %13 : vector<8xf32> to vector<8x1xf32>
    %15 = vector.broadcast %14 : vector<8x1xf32> to vector<8x128xf32>
    %16 = arith.subf %12, %15 : vector<8x128xf32>
    %17 = math.exp %16 : vector<8x128xf32>
    %cst_12 = arith.constant dense<0.000000e+00> : vector<8xf32>
    %18 = vector.multi_reduction <add>, %17, %cst_12 [1] : vector<8x128xf32> to vector<8xf32>
    %19 = vector.shape_cast %18 : vector<8xf32> to vector<8x1xf32>
    %20 = math.log %19 : vector<8x1xf32>
    %21 = vector.broadcast %20 : vector<8x1xf32> to vector<8x128xf32>
    %22 = arith.subf %16, %21 : vector<8x128xf32>
    %c0_13 = arith.constant 0 : index
    %c0_14 = arith.constant 0 : index
    %23 = vector.load %arg6[%c0_13, %c0_14] : memref<8x128xf32, #tpu.memory_space<vmem>>, vector<8x128xf32>
    tpu.vector_store %arg6[%c0_13, %c0_14], %22 {strides = array<i32>} : memref<8x128xf32, #tpu.memory_space<vmem>>, vector<8x128xf32>,
    return
  }
  func.func @transform_0(%arg0: i32) -> (i32, i32) {
    %c0_i32 = arith.constant 0 : i32
    %c0_i32_0 = arith.constant 0 : i32
    return %arg0, %c0_i32 : i32, i32
  }
  func.func @transform_1(%arg0: i32) -> (i32, i32) {
    %c0_i32 = arith.constant 0 : i32
    %c0_i32_0 = arith.constant 0 : i32
    %c0_i32_1 = arith.constant 0 : i32
    return %c0_i32, %c0_i32_0 : i32, i32
  }
  func.func @transform_2(%arg0: i32) -> (i32, i32) {
    %c0_i32 = arith.constant 0 : i32
    %c0_i32_0 = arith.constant 0 : i32
    %c0_i32_1 = arith.constant 0 : i32
    return %c0_i32, %c0_i32_0 : i32, i32
  }
  func.func @transform_3(%arg0: i32) -> (i32, i32) {
    %c0_i32 = arith.constant 0 : i32
    %c0_i32_0 = arith.constant 0 : i32
    %c0_i32_1 = arith.constant 0 : i32
    return %c0_i32, %c0_i32_0 : i32, i32
  }
  func.func @transform_4(%arg0: i32) -> (i32, i32) {
    %c0_i32 = arith.constant 0 : i32
    %c0_i32_0 = arith.constant 0 : i32
    %c0_i32_1 = arith.constant 0 : i32
    return %c0_i32, %c0_i32_0 : i32, i32
  }
  func.func @transform_5(%arg0: i32) -> (i32, i32) {
    %c0_i32 = arith.constant 0 : i32
    %c0_i32_0 = arith.constant 0 : i32
    return %arg0, %c0_i32 : i32, i32
  }
}

</mosaic_0001>

<bundles_post_ra>
// kernel: mlp_forward.1
= control target key start
LH: loop header
LB: loop body
LE: loop exit
PB: predicated region body
PF: predicated region fallthrough
CT: control target
= control target key end

     0   :  { %vm60_vm0 = vcmask 523264   ;;  %v404_v0 = vmov 0.0   ;;  %vm405_vm1 = vmmov 0   ;;  %s595_s1 = inlined_call_operand.vmem [shape: f32[128,64], index: 1, kind: input, shape index: {}]   ;;  %s596_s3 = inlined_call_operand.vmem [shape: f32[128,128], index: 3, kind: input, shape index: {}]   ;;  %s597_s0 = inlined_call_operand.vmem [shape: f32[8,64], index: 0, kind: input, shape index: {}]   ;;  %s598_s2 = inlined_call_operand.vmem [shape: f32[1,128], index: 2, kind: input, shape index: {}]   ;;  %s599_s4 = inlined_call_operand.vmem [shape: f32[1,128], index: 4, kind: input, shape index: {}]   ;;  %s600_s5 = inlined_call_operand.vmem [shape: f32[8,128], index: 5, kind: output, shape index: {}]  }
   0x1   :  { %328 = vmatprep.subr.mxu0 %v404_v0  ;;  %v36_v1 = vld [vmem:[%s595_s1 + $0x78] sm:$0xff]  ;;  %360 = vmatprep.mubr.msk.f32.mxu0 %vm405_vm1, %v404_v0  ;;  %v35_v2 = vld [vmem:[%s595_s1 + $0x70] sm:$0xff]  ;;  %v34_v4 = vld [vmem:[%s595_s1 + $0x68] sm:$0xff] }
   0x2   :  { %329 = vmatpush3.xpose.msk.msra.mxu0 %vm60_vm0, %v36_v1  ;;  %363 = vmatprep.subr.mxu1 %v404_v0  ;;  %v52_v3 = vld [vmem:[%s596_s3 + $0x78] sm:$0xff]  ;;  %v51_v5 = vld [vmem:[%s596_s3 + $0x70] sm:$0xff]  ;;  %v33_v6 = vld [vmem:[%s595_s1 + $0x60] sm:$0xff] }
   0x3   :  { %330 = vmatprep.subr.mxu0 %v404_v0  ;;  %395 = vmatprep.mubr.msk.f32.mxu1 %vm405_vm1, %v404_v0  ;;  %v50_v7 = vld [vmem:[%s596_s3 + $0x68] sm:$0xff]  ;;  %v32_v8 = vld [vmem:[%s595_s1 + $0x58] sm:$0xff]  ;;  %v49_v9 = vld [vmem:[%s596_s3 + $0x60] sm:$0xff] }
   0x4   :  { %364 = vmatpush3.xpose.msra.mxu1 %v52_v3  ;;  %v31_v10 = vld [vmem:[%s595_s1 + $0x50] sm:$0xff]  ;;  %v48_v11 = vld [vmem:[%s596_s3 + $0x58] sm:$0xff]  ;;  %v30_v12 = vld [vmem:[%s595_s1 + $0x48] sm:$0xff] }
   0x5   :  { %365 = vmatprep.subr.mxu1 %v404_v0  ;;  %v47_v13 = vld [vmem:[%s596_s3 + $0x50] sm:$0xff]  ;;  %v29_v14 = vld [vmem:[%s595_s1 + $0x40] sm:$0xff]  ;;  %v46_v15 = vld [vmem:[%s596_s3 + $0x48] sm:$0xff] }
   0x6   :  { %331 = vmatpush3.xpose.msk.msra.mxu0 %vm60_vm0, %v35_v2  ;;  %v28_v16 = vld [vmem:[%s595_s1 + $0x38] sm:$0xff]  ;;  %v45_v17 = vld [vmem:[%s596_s3 + $0x40] sm:$0xff]  ;;  %v27_v18 = vld [vmem:[%s595_s1 + $0x30] sm:$0xff] }
   0x7   :  { %332 = vmatprep.subr.mxu0 %v404_v0  ;;  %v44_v19 = vld [vmem:[%s596_s3 + $0x38] sm:$0xff]  ;;  %v26_v20 = vld [vmem:[%s595_s1 + $0x28] sm:$0xff]  ;;  %v43_v21 = vld [vmem:[%s596_s3 + $0x30] sm:$0xff] }
   0x8   :  { %366 = vmatpush3.xpose.msra.mxu1 %v51_v5  ;;  %v25_v22 = vld [vmem:[%s595_s1 + $0x20] sm:$0xff]  ;;  %v42_v23 = vld [vmem:[%s596_s3 + $0x28] sm:$0xff]  ;;  %v24_v24 = vld [vmem:[%s595_s1 + $0x18] sm:$0xff] }
   0x9   :  { %367 = vmatprep.subr.mxu1 %v404_v0  ;;  %v41_v25 = vld [vmem:[%s596_s3 + $0x20] sm:$0xff]  ;;  %v23_v26 = vld [vmem:[%s595_s1 + $0x10] sm:$0xff]  ;;  %v40_v27 = vld [vmem:[%s596_s3 + $0x18] sm:$0xff] }
   0xa   :  { %333 = vmatpush3.xpose.msk.msra.mxu0 %vm60_vm0, %v34_v4  ;;  %v22_v28 = vld [vmem:[%s595_s1 + $0x8] sm:$0xff]  ;;  %v39_v29 = vld [vmem:[%s596_s3 + $0x10] sm:$0xff]  ;;  %v21_v30 = vld [vmem:[%s595_s1] sm:$0xff] }
   0xb   :  { %334 = vmatprep.subr.mxu0 %v404_v0  ;;  %v38_v31 = vld [vmem:[%s596_s3 + $0x8] sm:$0xff]  ;;  %v20_v32 = vld [vmem:[%s597_s0] sm:$0xff] }
   0xc   :  { %368 = vmatpush3.xpose.msra.mxu1 %v50_v7  ;;  %v37_v33 = vld [vmem:[%s596_s3] sm:$0xff] }
   0xd   :  { %369 = vmatprep.subr.mxu1 %v404_v0  ;;  %v275_v34 = vld [vmem:[%s598_s2] ss:$0 sm:$0xff] }
   0xe   :  { %335 = vmatpush3.xpose.msk.msra.mxu0 %vm60_vm0, %v33_v6  ;;  %v293_v39 = vld [vmem:[%s599_s4] ss:$0 sm:$0xff] }
   0xf   :  { %336 = vmatprep.subr.mxu0 %v404_v0 }
  0x10   :  { %370 = vmatpush3.xpose.msra.mxu1 %v49_v9 }
  0x11   :  { %371 = vmatprep.subr.mxu1 %v404_v0 }
  0x12   :  { %337 = vmatpush3.xpose.msk.msra.mxu0 %vm60_vm0, %v32_v8 }
  0x13   :  { %338 = vmatprep.subr.mxu0 %v404_v0 }
  0x14   :  { %372 = vmatpush3.xpose.msra.mxu1 %v48_v11 }
  0x15   :  { %373 = vmatprep.subr.mxu1 %v404_v0 }
  0x16   :  { %339 = vmatpush3.xpose.msk.msra.mxu0 %vm60_vm0, %v31_v10 }
  0x17   :  { %340 = vmatprep.subr.mxu0 %v404_v0 }
  0x18   :  { %374 = vmatpush3.xpose.msra.mxu1 %v47_v13 }
  0x19   :  { %375 = vmatprep.subr.mxu1 %v404_v0 }
  0x1a   :  { %341 = vmatpush3.xpose.msk.msra.mxu0 %vm60_vm0, %v30_v12 }
  0x1b   :  { %342 = vmatprep.subr.mxu0 %v404_v0 }
  0x1c   :  { %376 = vmatpush3.xpose.msra.mxu1 %v46_v15 }
  0x1d   :  { %377 = vmatprep.subr.mxu1 %v404_v0 }
  0x1e   :  { %343 = vmatpush3.xpose.msk.msra.mxu0 %vm60_vm0, %v29_v14 }
  0x1f   :  { %344 = vmatprep.subr.mxu0 %v404_v0 }
  0x20   :  { %378 = vmatpush3.xpose.msra.mxu1 %v45_v17 }
  0x21   :  { %379 = vmatprep.subr.mxu1 %v404_v0 }
  0x22   :  { %345 = vmatpush3.xpose.msk.msra.mxu0 %vm60_vm0, %v28_v16 }
  0x23   :  { %346 = vmatprep.subr.mxu0 %v404_v0 }
  0x24   :  { %380 = vmatpush3.xpose.msra.mxu1 %v44_v19 }
  0x25   :  { %381 = vmatprep.subr.mxu1 %v404_v0 }
  0x26   :  { %347 = vmatpush3.xpose.msk.msra.mxu0 %vm60_vm0, %v27_v18 }
  0x27   :  { %348 = vmatprep.subr.mxu0 %v404_v0 }
  0x28   :  { %382 = vmatpush3.xpose.msra.mxu1 %v43_v21 }
  0x29   :  { %383 = vmatprep.subr.mxu1 %v404_v0 }
  0x2a   :  { %349 = vmatpush3.xpose.msk.msra.mxu0 %vm60_vm0, %v26_v20 }
  0x2b   :  { %350 = vmatprep.subr.mxu0 %v404_v0 }
  0x2c   :  { %384 = vmatpush3.xpose.msra.mxu1 %v42_v23 }
  0x2d   :  { %385 = vmatprep.subr.mxu1 %v404_v0 }
  0x2e   :  { %351 = vmatpush3.xpose.msk.msra.mxu0 %vm60_vm0, %v25_v22 }
  0x2f   :  { %352 = vmatprep.subr.mxu0 %v404_v0 }
  0x30   :  { %386 = vmatpush3.xpose.msra.mxu1 %v41_v25 }
  0x31   :  { %387 = vmatprep.subr.mxu1 %v404_v0 }
  0x32   :  { %353 = vmatpush3.xpose.msk.msra.mxu0 %vm60_vm0, %v24_v24 }
  0x33   :  { %354 = vmatprep.subr.mxu0 %v404_v0 }
  0x34   :  { %388 = vmatpush3.xpose.msra.mxu1 %v40_v27 }
  0x35   :  { %389 = vmatprep.subr.mxu1 %v404_v0 }
  0x36   :  { %355 = vmatpush3.xpose.msk.msra.mxu0 %vm60_vm0, %v23_v26 }
  0x37   :  { %356 = vmatprep.subr.mxu0 %v404_v0 }
  0x38   :  { %390 = vmatpush3.xpose.msra.mxu1 %v39_v29 }
  0x39   :  { %391 = vmatprep.subr.mxu1 %v404_v0 }
  0x3a   :  { %357 = vmatpush3.xpose.msk.msra.mxu0 %vm60_vm0, %v22_v28 }
  0x3b   :  { %358 = vmatprep.subr.mxu0 %v404_v0 }
  0x3c   :  { %392 = vmatpush3.xpose.msra.mxu1 %v38_v31 }
  0x3d   :  { %393 = vmatprep.subr.mxu1 %v404_v0 }
  0x3e   :  { %359 = vmatpush3.xpose.msk.msra.mxu0 %vm60_vm0, %v21_v30 }
  0x40   :  { %394 = vmatpush3.xpose.msra.mxu1 %v37_v33 }
  0x41   :  { %361 = vmatmul.mubr.msk.f32.vlgmr.msra.gmra.mxu0 %vm60_vm0, %v20_v32 }
 0x101   :  { %v178_v35 = vpop.f32.mrf.mxu0 }
 0x102   :  { %v179_v36 = vadd.f32 %v275_v34, %v178_v35 }
 0x103   :  { %v362_v37 = vpop.f32.mrf.mxu0 }
 0x104   :  { %v182_v38 = vmax.f32 %v179_v36, 0.0 }
 0x106   :  { %396 = vmatmul.mubr.f32.vlgmr.msra.gmra.mxu1 %v182_v38 }
 0x1c6   :  { %v256_v40 = vpop.f32.mrf.mxu1 }
 0x1c7   :  { %v257_v41 = vadd.f32 %v293_v39, %v256_v40 }
 0x1c8   :  { %v397_v42 = vpop.f32.mrf.mxu1 }
 0x1c9   :  { %260 = vmax.xlane.f32.xlu0 %v257_v41 }
 0x252   :  { %v261_v43 = vpop.xlane.xlu0 %260 }
 0x253   :  { %v262_v44 = vsub.f32 %v257_v41, %v261_v43 }
 0x255   :  { %v263_v45 = vmul.f32 1.442695, %v262_v44 }
 0x257   :  { %400 = vpow2.f32 %v263_v45 }
 0x264   :  { %v401_v46 = vpop.eup %400 }
 0x265   :  { %265 = vadd.xlane.f32.xlu0 %v401_v46 }
 0x2ee   :  { %v266_v47 = vpop.xlane.xlu0 %265 }
 0x2ef   :  { %402 = vlog2.f32 %v266_v47 }
 0x2fc   :  { %v403_v48 = vpop.eup %402 }
 0x2fd   :  { %v268_v49 = vmul.f32 0.6931472, %v403_v48 }
 0x2ff   :  { %v269_v50 = vsub.f32 %v262_v44, %v268_v49 }
 0x301   :  { %270 = vst [vmem:[%s600_s5] sm:$0xff] %v269_v50 }

</bundles_post_ra>
